<compile_context>
chip_gen: v5e
topology: v5e:2x2
jax: 0.10.0
libtpu: 0.0.40
codegen_flags: <defaults>
</compile_context>

<pallas_src>
import math

import jax
import jax.numpy as jnp
from jax.experimental import pallas as pl
from jax.experimental.pallas import tpu as pltpu


# ---------------------------------------------------------------------------
# Default materialization: single HBM -> HBM DMA (no VMEM / vreg traffic).
# ---------------------------------------------------------------------------
def _dma_copy_kernel(m_hbm, o_hbm, sem):
    cp = pltpu.make_async_copy(m_hbm, o_hbm, sem)
    cp.start()
    cp.wait()


def encoder_s_materialize_dma(M):
    """Materialize a fresh copy of M with one HBM->HBM DMA descriptor."""
    nbytes = M.size * jnp.dtype(M.dtype).itemsize
    return pl.pallas_call(
        _dma_copy_kernel,
        out_shape=jax.ShapeDtypeStruct(M.shape, M.dtype),
        in_specs=[pl.BlockSpec(memory_space=pl.ANY)],
        out_specs=pl.BlockSpec(memory_space=pl.ANY),
        scratch_shapes=[pltpu.SemaphoreType.DMA(())],
        compiler_params=pltpu.CompilerParams(has_side_effects=True),
        # Pure-bandwidth copy: read nbytes + write nbytes.  Lets XLA overlap
        # the opaque custom call with neighbouring compute.
        cost_estimate=pl.CostEstimate(
            flops=0, transcendentals=0, bytes_accessed=2 * nbytes
        ),
    )(M)


# ---------------------------------------------------------------------------
# Optional fusion skeleton: row-tiled, lane-dense pipelined VMEM pass.
# Only worth using if real compute is fused into the body; a standalone copy
# should go through encoder_s_materialize_dma instead.
# ---------------------------------------------------------------------------
def _tile_copy_kernel(m_ref, o_ref):
    o_ref[...] = m_ref[...]


def _chip_budgets():
    """(per-block byte budget, vmem_limit_bytes) tuned per TPU generation."""
    vmem_cap = 64 << 20  # conservative default (v7x-class)
    try:
        vmem_cap = pltpu.get_tpu_info().vmem_capacity_bytes
    except Exception:
        pass
    if vmem_cap <= (64 << 20):
        # v7x: 64 MiB physical VMEM per TC.  1-4 MiB tiles already reach
        # ~85% of the HBM roofline; leave headroom for co-resident kernels.
        return 2 << 20, 32 << 20
    # v5e / v6e: 128 MiB physical VMEM, but default scoped limit is small
    # (16/32 MiB), so keep the explicit 32 MiB limit.
    return 4 << 20, 32 << 20


def encoder_s_materialize_tiled(M, tile_r=None):
    """Row-tiled copy: blocks are (tile_r, n_spot) -- full-width, lane-dense.

    tile_r is a multiple of 8 (or the full row count); the last dim is always
    the full array width, which is a legal block shape for ANY n_spot (the
    (8,128) rule applies to block_shape, and a full-extent dim is exempt).
    The trailing partial row block is handled by the cdiv grid.
    """
    n_r, n_c = M.shape
    itemsize = jnp.dtype(M.dtype).itemsize
    tile_budget, vmem_limit = _chip_budgets()

    if tile_r is None:
        rows = max(8, tile_budget // max(1, n_c * itemsize))
        rows = max(8, (rows // 8) * 8)
        tile_r = n_r if rows >= n_r else rows
    else:
        tile_r = min(tile_r, n_r)
        if tile_r != n_r and tile_r % 8 != 0:
            raise ValueError("tile_r must be a multiple of 8 (or equal n_spot)")

    # Double-buffered input + output blocks must fit under the VMEM limit.
    tile_bytes = tile_r * n_c * itemsize
    vmem_limit = max(vmem_limit, 4 * tile_bytes + (1 << 20))

    nbytes = M.size * itemsize
    grid = (pl.cdiv(n_r, tile_r),)
    return pl.pallas_call(
        _tile_copy_kernel,
        out_shape=jax.ShapeDtypeStruct((n_r, n_c), M.dtype),
        grid=grid,
        in_specs=[pl.BlockSpec((tile_r, n_c), lambda i: (i, 0))],
        out_specs=pl.BlockSpec((tile_r, n_c), lambda i: (i, 0)),
        compiler_params=pltpu.CompilerParams(
            dimension_semantics=("parallel",),  # shards rows across v7x's 2 TCs
            vmem_limit_bytes=vmem_limit,
        ),
        cost_estimate=pl.CostEstimate(
            flops=0, transcendentals=0, bytes_accessed=2 * nbytes
        ),
    )(M)


# ---------------------------------------------------------------------------
# Forward wrapper: Encoder_S.forward() just returns M.
# ---------------------------------------------------------------------------
def encoder_s_forward(M, *, materialize=False, use_tiled_pipeline=False):
    """Pallas equivalent of Encoder_S.forward().

    Default: returns the parameter M directly (identity -> zero HBM traffic).
    materialize=True: fresh buffer via a single HBM->HBM DMA (default), or via
    the row-tiled VMEM pipeline when use_tiled_pipeline=True (only useful as a
    fusion skeleton; strictly slower for a standalone copy).
    """
    if not materialize:
        return M
    if use_tiled_pipeline:
        return encoder_s_materialize_tiled(M)
    return encoder_s_materialize_dma(M)


def init_encoder_s_params(key, n_spot):
    """Xavier-uniform init of M, matching torch.nn.init.xavier_uniform_."""
    bound = math.sqrt(6.0 / (n_spot + n_spot))
    return jax.random.uniform(
        key, (n_spot, n_spot), dtype=jnp.float32, minval=-bound, maxval=bound
    )


if __name__ == "__main__":
    key = jax.random.PRNGKey(0)
    k0, k1 = jax.random.split(key)

    # (8,128)-aligned small case.
    n_spot = 256
    M = init_encoder_s_params(k0, n_spot)

    # 1) Default forward: true identity -- no kernel launch, no copy.
    out_id = encoder_s_forward(M)
    assert out_id is M  # aliasing semantics, same as PyTorch's `return self.M`

    # 2) Default materialization: single HBM->HBM DMA.
    out_dma = jax.block_until_ready(encoder_s_forward(M, materialize=True))
    assert out_dma.shape == (n_spot, n_spot) and out_dma.dtype == jnp.float32
    assert bool(jnp.all(out_dma == M))

    # 3) Fusion-skeleton tiled path, including an unaligned n_spot
    #    (n_r % 8 != 0, n_c % 128 != 0) to exercise full-width blocks +
    #    cdiv partial trailing block.
    n_spot_u = 250
    M_u = init_encoder_s_params(k1, n_spot_u)
    out_tiled = jax.block_until_ready(
        encoder_s_forward(M_u, materialize=True, use_tiled_pipeline=True)
    )
    assert out_tiled.shape == (n_spot_u, n_spot_u)
    assert bool(jnp.all(out_tiled == M_u))

    print("KERNEL_OK")
</pallas_src>

<mosaic_0001>
module attributes {stable_mosaic.version = 11 : i64} {
  func.func @_dma_copy_kernel(%arg0: memref<256x256xf32, #tpu.memory_space<any>>, %arg1: memref<256x256xf32, #tpu.memory_space<any>>, %arg2: memref<!tpu.dma_semaphore, #tpu.memory_space<semaphore_mem>>) attributes {dimension_semantics = [], scalar_prefetch = 0 : i64, scratch_operands = 1 : i64, tpu.core_type = #tpu.core_type<tc>} {
    tpu.enqueue_dma source(%arg0 : memref<256x256xf32, #tpu.memory_space<any>>) target(%arg1 : memref<256x256xf32, #tpu.memory_space<any>>) target_semaphore(%arg2 : memref<!tpu.dma_semaphore, #tpu.memory_space<semaphore_mem>>)
    tpu.wait_dma2 semaphore(%arg2 : memref<!tpu.dma_semaphore, #tpu.memory_space<semaphore_mem>>) src(%arg0 : memref<256x256xf32, #tpu.memory_space<any>>) dst(%arg1 : memref<256x256xf32, #tpu.memory_space<any>>)
    return
  }
}

</mosaic_0001>

<bundles_post_ra>
// kernel: tpu_custom_call.1
= control target key start
LH: loop header
LB: loop body
LE: loop exit
PB: predicated region body
PF: predicated region fallthrough
CT: control target
= control target key end

     0   :  { %s33_s12 = smov [#allocation2]   ;;  %s34_s13 = smov [#allocation3]   ;;  %s52_s0 = inlined_call_operand.hbm [shape: f32[256,256], index: 0, kind: input, shape index: {}]   ;;  %s53_s1 = inlined_call_operand.hbm [shape: f32[256,256], index: 1, kind: output, shape index: {}]  }
   0x1   :  { %s10_s8 = sshll.u32 %s52_s0, 4  ;;  %s12_s11 = sshll.u32 %s53_s1, 4  ;;  %s11_s8 = int_to_ptr.hbm [resolvable:$true] %s10_s8  ;;  %s13_s11 = int_to_ptr.hbm [resolvable:$true] %s12_s11 }
   0x2   :  { %s35_s14 = smov 0  }
   0x3   :  { %16 = dma.general %s11_s8, 8192, %s13_s11, %s33_s12, %s34_s13, [#allocation4], %s35_s14, 0  }
   0x4   :  { %31 = dma.done.wait [#allocation2], 8192 }
   0x5   :  { %32 = vsyncadd [#allocation2], 4294959104 }
   0x6   :  { %21 = vsyncmov [#allocation2] }
   0x9   :  { %s22_s15 = vpop.sfrf %21 }
   0xa   :  { %p27_p0 = scmp.ne.s32.totalorder %s22_s15, 0 }
   0xc   :  { %26 = shalt.err (%p27_p0)  }

</bundles_post_ra>
